<compile_context>
chip_gen: v7x
topology: tpu7x:2x2x1
jax: 0.10.0
libtpu: 0.0.40
codegen_flags: <defaults>
</compile_context>

<pallas_src>
import jax
import jax.numpy as jnp
from jax.experimental import pallas as pl
from jax.experimental.pallas import tpu as pltpu

KERNEL_SIZE = 41
PAD = (KERNEL_SIZE - 1) // 2
EPS = 1e-5  # nn.GroupNorm default eps


def gc_kernel(x_ref, w1t_ref, w2_ref, w3_ref, gamma_ref, beta_ref, out_ref):
    TB, C, Tp = x_ref.shape
    xdtype = x_ref.dtype
    w1t = w1t_ref[...]                                   # (K, C), x dtype

    zpad = jnp.zeros((KERNEL_SIZE, PAD), jnp.float32)

    cv_cols = []
    for b in range(TB):                                  # TB is small & static
        xb = x_ref[b]                                    # (C, Tp), native dtype

        # --- conv1d(C -> 1, kernel=41, pad=20, bias=False) along T ----------
        # One MXU matmul does the C-contraction; the 41-tap time window is
        # then a diagonal sum over the small (K, Tp) result.
        partial = jnp.dot(w1t, xb,
                          preferred_element_type=jnp.float32)   # (K, Tp) f32
        ppad = jnp.concatenate([zpad, partial, zpad], axis=1)   # (K, Tp+2*PAD)
        ctx = ppad[0:1, 0:Tp]                                   # (1, Tp)
        for k in range(1, KERNEL_SIZE):                         # (1,Tp) rows only
            ctx = ctx + ppad[k:k + 1, k:k + Tp]
        sig = jax.nn.sigmoid(ctx)                               # (1, Tp) f32

        # --- bmm(x, sigmoid(context)^T): global context vector --------------
        prod = xb * sig.astype(xdtype)                          # (C, Tp)
        cv_cols.append(jnp.sum(prod.astype(jnp.float32),
                               axis=1, keepdims=True))          # (C, 1) f32

    cv = cv_cols[0] if TB == 1 else jnp.concatenate(cv_cols, axis=1)  # (C, TB)

    # --- 1x1 conv (C -> C//8), bias=False ------------------------------------
    tr = jnp.dot(w2_ref[...], cv,
                 preferred_element_type=jnp.float32)            # (C8, TB)

    # --- GroupNorm(num_groups=1, num_channels=C//8), spatial extent = 1 ------
    mean = jnp.mean(tr, axis=0, keepdims=True)                  # (1, TB)
    var = jnp.mean((tr - mean) ** 2, axis=0, keepdims=True)     # biased variance
    tr = (tr - mean) * jax.lax.rsqrt(var + EPS)
    tr = tr * gamma_ref[...] + beta_ref[...]                    # (C8,1) bcast

    # --- Swish ----------------------------------------------------------------
    tr = tr * jax.nn.sigmoid(tr)

    # --- 1x1 conv (C//8 -> C), bias=False -------------------------------------
    t3 = jnp.dot(w3_ref[...], tr,
                 preferred_element_type=jnp.float32)            # (C, TB)

    # --- repeat(1, 1, T) * x  (broadcast gate over time) -----------------------
    for b in range(TB):
        gate = t3[:, b:b + 1].astype(xdtype)                    # (C, 1)
        out_ref[b] = (gate * x_ref[b]).astype(out_ref.dtype)


def _pick_batch_block(B, C, Tp, itemsize, vmem_budget_bytes=24 * (1 << 20)):
    """Largest divisor of B that keeps the grid >= 2 (when possible) and keeps
    the double-buffered in+out blocks under a conservative VMEM budget."""
    cap = 8
    if B >= 2:
        cap = min(cap, B // 2)     # leave >=2 grid steps for v7x's 2 TCs
    cap = max(cap, 1)
    best = 1
    for d in range(1, min(cap, B) + 1):
        if B % d != 0:
            continue
        if 4 * d * C * Tp * itemsize <= vmem_budget_bytes:   # 2 bufs x (in+out)
            best = d
    return best


def contextnet_gc_forward(x, params, input_lengths=None):
    """Pallas forward. `input_lengths` is accepted for API parity with the
    PyTorch module but is unused there as well."""
    del input_lengths
    B, C, T = x.shape
    C8 = params["w2"].shape[0]

    # Pad T to a lane-dense multiple of 128; padded columns are zero, so the
    # valid region is bit-for-bit identical (zero conv padding + zero gate).
    Tp = ((T + 127) // 128) * 128
    xp = x if Tp == T else jnp.pad(x, ((0, 0), (0, 0), (0, Tp - T)))

    itemsize = jnp.dtype(x.dtype).itemsize
    TB = _pick_batch_block(B, C, Tp, itemsize)
    grid = (B // TB,)

    # Weight layouts: conv weight transposed once in the wrapper -> (K, C) so
    # the in-kernel conv is a plain (K,C)@(C,T) MXU matmul.
    w1t = params["w1"].T.astype(x.dtype)                 # (K, C)
    w2 = params["w2"].astype(jnp.float32)                # (C8, C)
    w3 = params["w3"].astype(jnp.float32)                # (C, C8)
    gamma = params["gamma"].astype(jnp.float32)          # (C8, 1)
    beta = params["beta"].astype(jnp.float32)            # (C8, 1)

    block_bytes = TB * C * Tp * itemsize
    vmem_limit = int(min(48 * (1 << 20), max(24 * (1 << 20), 6 * block_bytes)))

    out = pl.pallas_call(
        gc_kernel,
        out_shape=jax.ShapeDtypeStruct((B, C, Tp), x.dtype),
        grid=grid,
        in_specs=[
            pl.BlockSpec((TB, C, Tp), lambda i: (i, 0, 0)),        # x
            pl.BlockSpec((KERNEL_SIZE, C), lambda i: (0, 0)),      # conv weight^T
            pl.BlockSpec((C8, C), lambda i: (0, 0)),               # conv2 weight
            pl.BlockSpec((C, C8), lambda i: (0, 0)),               # conv3 weight
            pl.BlockSpec((C8, 1), lambda i: (0, 0)),               # groupnorm gamma
            pl.BlockSpec((C8, 1), lambda i: (0, 0)),               # groupnorm beta
        ],
        out_specs=pl.BlockSpec((TB, C, Tp), lambda i: (i, 0, 0)),
        compiler_params=pltpu.CompilerParams(
            dimension_semantics=("parallel",),
            vmem_limit_bytes=vmem_limit,
        ),
    )(xp, w1t, w2, w3, gamma, beta)

    return out if Tp == T else out[:, :, :T]


def reference_forward(x, params):
    """Pure-JAX reference reproducing the PyTorch forward."""
    w1, w2, w3 = params["w1"], params["w2"], params["w3"]
    gamma, beta = params["gamma"], params["beta"]
    B, C, T = x.shape
    xpad = jnp.pad(x, ((0, 0), (0, 0), (PAD, PAD)))
    ctx = jnp.zeros((B, T), jnp.float32)
    for k in range(KERNEL_SIZE):
        ctx = ctx + jnp.sum(xpad[:, :, k:k + T] * w1[None, :, k:k + 1], axis=1)
    sig = jax.nn.sigmoid(ctx)                                  # (B, T)
    cv = jnp.einsum("bct,bt->bc", x, sig)                      # (B, C)
    tr = jnp.einsum("dc,bc->bd", w2, cv)                       # (B, C//8)
    mean = tr.mean(axis=1, keepdims=True)
    var = ((tr - mean) ** 2).mean(axis=1, keepdims=True)
    tr = (tr - mean) / jnp.sqrt(var + EPS)
    tr = tr * gamma[:, 0][None, :] + beta[:, 0][None, :]
    tr = tr * jax.nn.sigmoid(tr)
    t3 = jnp.einsum("cd,bd->bc", w3, tr)                       # (B, C)
    return t3[:, :, None] * x


if __name__ == "__main__":
    B, C, T = 2, 32, 16          # dim=32 -> dim//8 = 4
    C8 = C // 8

    key = jax.random.PRNGKey(0)
    kx, k1, k2, k3, kg, kb = jax.random.split(key, 6)

    x = jax.random.normal(kx, (B, C, T), dtype=jnp.float32)
    input_lengths = jnp.full((B,), T, dtype=jnp.int32)   # unused (matches PyTorch)

    params = {
        # nn.Conv1d(dim, 1, 41, bias=False) weight (1, C, K) -> stored as (C, K)
        "w1": jax.random.normal(k1, (C, KERNEL_SIZE), jnp.float32)
        / jnp.sqrt(C * KERNEL_SIZE).astype(jnp.float32),
        # nn.Conv1d(dim, dim//8, 1, bias=False) weight (C//8, C, 1) -> (C//8, C)
        "w2": jax.random.normal(k2, (C8, C), jnp.float32) / jnp.sqrt(jnp.float32(C)),
        # nn.Conv1d(dim//8, dim, 1, bias=False) weight (C, C//8, 1) -> (C, C//8)
        "w3": jax.random.normal(k3, (C, C8), jnp.float32) / jnp.sqrt(jnp.float32(C8)),
        # GroupNorm affine params (deterministic synthetic init)
        "gamma": 1.0 + 0.1 * jax.random.normal(kg, (C8, 1), jnp.float32),
        "beta": 0.1 * jax.random.normal(kb, (C8, 1), jnp.float32),
    }

    out = contextnet_gc_forward(x, params, input_lengths)
    out = jax.block_until_ready(out)

    ref = reference_forward(x, params)
    assert out.shape == (B, C, T)
    assert jnp.allclose(out, ref, rtol=1e-4, atol=1e-4), (
        f"max abs err {jnp.max(jnp.abs(out - ref))}"
    )
    print("KERNEL_OK")
</pallas_src>

<mosaic_0001>
module attributes {stable_mosaic.version = 11 : i64} {
  func.func @gc_kernel(%arg0: i32, %arg1: memref<1x32x128xf32, #tpu.memory_space<vmem>>, %arg2: memref<41x32xf32, #tpu.memory_space<vmem>>, %arg3: memref<4x32xf32, #tpu.memory_space<vmem>>, %arg4: memref<32x4xf32, #tpu.memory_space<vmem>>, %arg5: memref<4x1xf32, #tpu.memory_space<vmem>>, %arg6: memref<4x1xf32, #tpu.memory_space<vmem>>, %arg7: memref<1x32x128xf32, #tpu.memory_space<vmem>>) attributes {dimension_semantics = [#tpu.dimension_semantics<parallel>], iteration_bounds = array<i64: 2>, scalar_prefetch = 0 : i64, scratch_operands = 0 : i64, tpu.core_type = #tpu.core_type<tc>, window_params = [{transform_indices = @transform_0, window_bounds = array<i64: 1, 32, 128>}, {pipeline_mode = #tpu.pipeline_mode<synchronous>, transform_indices = @transform_1, window_bounds = array<i64: 41, 32>}, {pipeline_mode = #tpu.pipeline_mode<synchronous>, transform_indices = @transform_2, window_bounds = array<i64: 4, 32>}, {pipeline_mode = #tpu.pipeline_mode<synchronous>, transform_indices = @transform_3, window_bounds = array<i64: 32, 4>}, {pipeline_mode = #tpu.pipeline_mode<synchronous>, transform_indices = @transform_4, window_bounds = array<i64: 4, 1>}, {pipeline_mode = #tpu.pipeline_mode<synchronous>, transform_indices = @transform_5, window_bounds = array<i64: 4, 1>}, {transform_indices = @transform_6, window_bounds = array<i64: 1, 32, 128>}]} {
    %c0 = arith.constant 0 : index
    %c0_0 = arith.constant 0 : index
    %0 = vector.load %arg2[%c0, %c0_0] : memref<41x32xf32, #tpu.memory_space<vmem>>, vector<41x32xf32>
    %cst = arith.constant 0.000000e+00 : f32
    %1 = vector.broadcast %cst : f32 to vector<41x20xf32>
    %c0_1 = arith.constant 0 : index
    %c0_2 = arith.constant 0 : index
    %c0_3 = arith.constant 0 : index
    %2 = vector.load %arg1[%c0_1, %c0_2, %c0_3] : memref<1x32x128xf32, #tpu.memory_space<vmem>>, vector<1x32x128xf32>
    %3 = vector.shape_cast %2 : vector<1x32x128xf32> to vector<32x128xf32>
    %cst_4 = arith.constant dense<0.000000e+00> : vector<41x128xf32>
    %4 = tpu.matmul %0, %3, %cst_4 {dimension_numbers = #tpu.dot_dimension_numbers<[1], [0], [0], [1], [0, 0, 1, 1], [], []>} : vector<41x32xf32>, vector<32x128xf32>, vector<41x128xf32> -> vector<41x128xf32>
    %5 = tpu.concatenate %1, %4, %1 in 1 : vector<41x20xf32>, vector<41x128xf32>, vector<41x20xf32> -> vector<41x168xf32>
    %6 = vector.extract_strided_slice %5 {offsets = [0, 0], sizes = [1, 128], strides = [1, 1]} : vector<41x168xf32> to vector<1x128xf32>
    %7 = vector.extract_strided_slice %5 {offsets = [1, 1], sizes = [1, 128], strides = [1, 1]} : vector<41x168xf32> to vector<1x128xf32>
    %8 = arith.addf %6, %7 : vector<1x128xf32>
    %9 = vector.extract_strided_slice %5 {offsets = [2, 2], sizes = [1, 128], strides = [1, 1]} : vector<41x168xf32> to vector<1x128xf32>
    %10 = arith.addf %8, %9 : vector<1x128xf32>
    %11 = vector.extract_strided_slice %5 {offsets = [3, 3], sizes = [1, 128], strides = [1, 1]} : vector<41x168xf32> to vector<1x128xf32>
    %12 = arith.addf %10, %11 : vector<1x128xf32>
    %13 = vector.extract_strided_slice %5 {offsets = [4, 4], sizes = [1, 128], strides = [1, 1]} : vector<41x168xf32> to vector<1x128xf32>
    %14 = arith.addf %12, %13 : vector<1x128xf32>
    %15 = vector.extract_strided_slice %5 {offsets = [5, 5], sizes = [1, 128], strides = [1, 1]} : vector<41x168xf32> to vector<1x128xf32>
    %16 = arith.addf %14, %15 : vector<1x128xf32>
    %17 = vector.extract_strided_slice %5 {offsets = [6, 6], sizes = [1, 128], strides = [1, 1]} : vector<41x168xf32> to vector<1x128xf32>
    %18 = arith.addf %16, %17 : vector<1x128xf32>
    %19 = vector.extract_strided_slice %5 {offsets = [7, 7], sizes = [1, 128], strides = [1, 1]} : vector<41x168xf32> to vector<1x128xf32>
    %20 = arith.addf %18, %19 : vector<1x128xf32>
    %21 = vector.extract_strided_slice %5 {offsets = [8, 8], sizes = [1, 128], strides = [1, 1]} : vector<41x168xf32> to vector<1x128xf32>
    %22 = arith.addf %20, %21 : vector<1x128xf32>
    %23 = vector.extract_strided_slice %5 {offsets = [9, 9], sizes = [1, 128], strides = [1, 1]} : vector<41x168xf32> to vector<1x128xf32>
    %24 = arith.addf %22, %23 : vector<1x128xf32>
    %25 = vector.extract_strided_slice %5 {offsets = [10, 10], sizes = [1, 128], strides = [1, 1]} : vector<41x168xf32> to vector<1x128xf32>
    %26 = arith.addf %24, %25 : vector<1x128xf32>
    %27 = vector.extract_strided_slice %5 {offsets = [11, 11], sizes = [1, 128], strides = [1, 1]} : vector<41x168xf32> to vector<1x128xf32>
    %28 = arith.addf %26, %27 : vector<1x128xf32>
    %29 = vector.extract_strided_slice %5 {offsets = [12, 12], sizes = [1, 128], strides = [1, 1]} : vector<41x168xf32> to vector<1x128xf32>
    %30 = arith.addf %28, %29 : vector<1x128xf32>
    %31 = vector.extract_strided_slice %5 {offsets = [13, 13], sizes = [1, 128], strides = [1, 1]} : vector<41x168xf32> to vector<1x128xf32>
    %32 = arith.addf %30, %31 : vector<1x128xf32>
    %33 = vector.extract_strided_slice %5 {offsets = [14, 14], sizes = [1, 128], strides = [1, 1]} : vector<41x168xf32> to vector<1x128xf32>
    %34 = arith.addf %32, %33 : vector<1x128xf32>
    %35 = vector.extract_strided_slice %5 {offsets = [15, 15], sizes = [1, 128], strides = [1, 1]} : vector<41x168xf32> to vector<1x128xf32>
    %36 = arith.addf %34, %35 : vector<1x128xf32>
    %37 = vector.extract_strided_slice %5 {offsets = [16, 16], sizes = [1, 128], strides = [1, 1]} : vector<41x168xf32> to vector<1x128xf32>
    %38 = arith.addf %36, %37 : vector<1x128xf32>
    %39 = vector.extract_strided_slice %5 {offsets = [17, 17], sizes = [1, 128], strides = [1, 1]} : vector<41x168xf32> to vector<1x128xf32>
    %40 = arith.addf %38, %39 : vector<1x128xf32>
    %41 = vector.extract_strided_slice %5 {offsets = [18, 18], sizes = [1, 128], strides = [1, 1]} : vector<41x168xf32> to vector<1x128xf32>
    %42 = arith.addf %40, %41 : vector<1x128xf32>
    %43 = vector.extract_strided_slice %5 {offsets = [19, 19], sizes = [1, 128], strides = [1, 1]} : vector<41x168xf32> to vector<1x128xf32>
    %44 = arith.addf %42, %43 : vector<1x128xf32>
    %45 = vector.extract_strided_slice %5 {offsets = [20, 20], sizes = [1, 128], strides = [1, 1]} : vector<41x168xf32> to vector<1x128xf32>
    %46 = arith.addf %44, %45 : vector<1x128xf32>
    %47 = vector.extract_strided_slice %5 {offsets = [21, 21], sizes = [1, 128], strides = [1, 1]} : vector<41x168xf32> to vector<1x128xf32>
    %48 = arith.addf %46, %47 : vector<1x128xf32>
    %49 = vector.extract_strided_slice %5 {offsets = [22, 22], sizes = [1, 128], strides = [1, 1]} : vector<41x168xf32> to vector<1x128xf32>
    %50 = arith.addf %48, %49 : vector<1x128xf32>
    %51 = vector.extract_strided_slice %5 {offsets = [23, 23], sizes = [1, 128], strides = [1, 1]} : vector<41x168xf32> to vector<1x128xf32>
    %52 = arith.addf %50, %51 : vector<1x128xf32>
    %53 = vector.extract_strided_slice %5 {offsets = [24, 24], sizes = [1, 128], strides = [1, 1]} : vector<41x168xf32> to vector<1x128xf32>
    %54 = arith.addf %52, %53 : vector<1x128xf32>
    %55 = vector.extract_strided_slice %5 {offsets = [25, 25], sizes = [1, 128], strides = [1, 1]} : vector<41x168xf32> to vector<1x128xf32>
    %56 = arith.addf %54, %55 : vector<1x128xf32>
    %57 = vector.extract_strided_slice %5 {offsets = [26, 26], sizes = [1, 128], strides = [1, 1]} : vector<41x168xf32> to vector<1x128xf32>
    %58 = arith.addf %56, %57 : vector<1x128xf32>
    %59 = vector.extract_strided_slice %5 {offsets = [27, 27], sizes = [1, 128], strides = [1, 1]} : vector<41x168xf32> to vector<1x128xf32>
    %60 = arith.addf %58, %59 : vector<1x128xf32>
    %61 = vector.extract_strided_slice %5 {offsets = [28, 28], sizes = [1, 128], strides = [1, 1]} : vector<41x168xf32> to vector<1x128xf32>
    %62 = arith.addf %60, %61 : vector<1x128xf32>
    %63 = vector.extract_strided_slice %5 {offsets = [29, 29], sizes = [1, 128], strides = [1, 1]} : vector<41x168xf32> to vector<1x128xf32>
    %64 = arith.addf %62, %63 : vector<1x128xf32>
    %65 = vector.extract_strided_slice %5 {offsets = [30, 30], sizes = [1, 128], strides = [1, 1]} : vector<41x168xf32> to vector<1x128xf32>
    %66 = arith.addf %64, %65 : vector<1x128xf32>
    %67 = vector.extract_strided_slice %5 {offsets = [31, 31], sizes = [1, 128], strides = [1, 1]} : vector<41x168xf32> to vector<1x128xf32>
    %68 = arith.addf %66, %67 : vector<1x128xf32>
    %69 = vector.extract_strided_slice %5 {offsets = [32, 32], sizes = [1, 128], strides = [1, 1]} : vector<41x168xf32> to vector<1x128xf32>
    %70 = arith.addf %68, %69 : vector<1x128xf32>
    %71 = vector.extract_strided_slice %5 {offsets = [33, 33], sizes = [1, 128], strides = [1, 1]} : vector<41x168xf32> to vector<1x128xf32>
    %72 = arith.addf %70, %71 : vector<1x128xf32>
    %73 = vector.extract_strided_slice %5 {offsets = [34, 34], sizes = [1, 128], strides = [1, 1]} : vector<41x168xf32> to vector<1x128xf32>
    %74 = arith.addf %72, %73 : vector<1x128xf32>
    %75 = vector.extract_strided_slice %5 {offsets = [35, 35], sizes = [1, 128], strides = [1, 1]} : vector<41x168xf32> to vector<1x128xf32>
    %76 = arith.addf %74, %75 : vector<1x128xf32>
    %77 = vector.extract_strided_slice %5 {offsets = [36, 36], sizes = [1, 128], strides = [1, 1]} : vector<41x168xf32> to vector<1x128xf32>
    %78 = arith.addf %76, %77 : vector<1x128xf32>
    %79 = vector.extract_strided_slice %5 {offsets = [37, 37], sizes = [1, 128], strides = [1, 1]} : vector<41x168xf32> to vector<1x128xf32>
    %80 = arith.addf %78, %79 : vector<1x128xf32>
    %81 = vector.extract_strided_slice %5 {offsets = [38, 38], sizes = [1, 128], strides = [1, 1]} : vector<41x168xf32> to vector<1x128xf32>
    %82 = arith.addf %80, %81 : vector<1x128xf32>
    %83 = vector.extract_strided_slice %5 {offsets = [39, 39], sizes = [1, 128], strides = [1, 1]} : vector<41x168xf32> to vector<1x128xf32>
    %84 = arith.addf %82, %83 : vector<1x128xf32>
    %85 = vector.extract_strided_slice %5 {offsets = [40, 40], sizes = [1, 128], strides = [1, 1]} : vector<41x168xf32> to vector<1x128xf32>
    %86 = arith.addf %84, %85 : vector<1x128xf32>
    %87 = arith.negf %86 : vector<1x128xf32>
    %88 = math.exp %87 : vector<1x128xf32>
    %cst_5 = arith.constant 1.000000e+00 : f32
    %89 = vector.broadcast %cst_5 : f32 to vector<1x128xf32>
    %90 = arith.addf %89, %88 : vector<1x128xf32>
    %91 = arith.divf %89, %90 : vector<1x128xf32>
    %92 = vector.broadcast %91 : vector<1x128xf32> to vector<32x128xf32>
    %93 = arith.mulf %3, %92 : vector<32x128xf32>
    %cst_6 = arith.constant dense<0.000000e+00> : vector<32xf32>
    %94 = vector.multi_reduction <add>, %93, %cst_6 [1] : vector<32x128xf32> to vector<32xf32>
    %95 = vector.shape_cast %94 : vector<32xf32> to vector<32x1xf32>
    %c0_7 = arith.constant 0 : index
    %c0_8 = arith.constant 0 : index
    %96 = vector.load %arg3[%c0_7, %c0_8] : memref<4x32xf32, #tpu.memory_space<vmem>>, vector<4x32xf32>
    %cst_9 = arith.constant dense<0.000000e+00> : vector<4x1xf32>
    %97 = tpu.matmul %96, %95, %cst_9 {dimension_numbers = #tpu.dot_dimension_numbers<[1], [0], [0], [1], [0, 0, 1, 1], [], []>} : vector<4x32xf32>, vector<32x1xf32>, vector<4x1xf32> -> vector<4x1xf32>
    %cst_10 = arith.constant dense<0.000000e+00> : vector<1xf32>
    %98 = vector.multi_reduction <add>, %97, %cst_10 [0] : vector<4x1xf32> to vector<1xf32>
    %99 = vector.shape_cast %98 : vector<1xf32> to vector<1x1xf32>
    %cst_11 = arith.constant 4.000000e+00 : f32
    %100 = vector.broadcast %cst_11 : f32 to vector<1x1xf32>
    %101 = arith.divf %99, %100 : vector<1x1xf32>
    %102 = vector.broadcast %101 : vector<1x1xf32> to vector<4x1xf32>
    %103 = arith.subf %97, %102 : vector<4x1xf32>
    %104 = arith.mulf %103, %103 : vector<4x1xf32>
    %cst_12 = arith.constant dense<0.000000e+00> : vector<1xf32>
    %105 = vector.multi_reduction <add>, %104, %cst_12 [0] : vector<4x1xf32> to vector<1xf32>
    %106 = vector.shape_cast %105 : vector<1xf32> to vector<1x1xf32>
    %cst_13 = arith.constant 4.000000e+00 : f32
    %107 = vector.broadcast %cst_13 : f32 to vector<1x1xf32>
    %108 = arith.divf %106, %107 : vector<1x1xf32>
    %109 = vector.broadcast %101 : vector<1x1xf32> to vector<4x1xf32>
    %110 = arith.subf %97, %109 : vector<4x1xf32>
    %cst_14 = arith.constant 9.99999974E-6 : f32
    %111 = vector.broadcast %cst_14 : f32 to vector<1x1xf32>
    %112 = arith.addf %108, %111 : vector<1x1xf32>
    %113 = math.rsqrt %112 : vector<1x1xf32>
    %114 = vector.broadcast %113 : vector<1x1xf32> to vector<4x1xf32>
    %115 = arith.mulf %110, %114 : vector<4x1xf32>
    %c0_15 = arith.constant 0 : index
    %c0_16 = arith.constant 0 : index
    %116 = vector.load %arg5[%c0_15, %c0_16] : memref<4x1xf32, #tpu.memory_space<vmem>>, vector<4x1xf32>
    %117 = arith.mulf %115, %116 : vector<4x1xf32>
    %c0_17 = arith.constant 0 : index
    %c0_18 = arith.constant 0 : index
    %118 = vector.load %arg6[%c0_17, %c0_18] : memref<4x1xf32, #tpu.memory_space<vmem>>, vector<4x1xf32>
    %119 = arith.addf %117, %118 : vector<4x1xf32>
    %120 = arith.negf %119 : vector<4x1xf32>
    %121 = math.exp %120 : vector<4x1xf32>
    %cst_19 = arith.constant 1.000000e+00 : f32
    %122 = vector.broadcast %cst_19 : f32 to vector<4x1xf32>
    %123 = arith.addf %122, %121 : vector<4x1xf32>
    %124 = arith.divf %122, %123 : vector<4x1xf32>
    %125 = arith.mulf %119, %124 : vector<4x1xf32>
    %c0_20 = arith.constant 0 : index
    %c0_21 = arith.constant 0 : index
    %126 = vector.load %arg4[%c0_20, %c0_21] : memref<32x4xf32, #tpu.memory_space<vmem>>, vector<32x4xf32>
    %cst_22 = arith.constant dense<0.000000e+00> : vector<32x1xf32>
    %127 = tpu.matmul %126, %125, %cst_22 {dimension_numbers = #tpu.dot_dimension_numbers<[1], [0], [0], [1], [0, 0, 1, 1], [], []>} : vector<32x4xf32>, vector<4x1xf32>, vector<32x1xf32> -> vector<32x1xf32>
    %c0_23 = arith.constant 0 : index
    %c0_24 = arith.constant 0 : index
    %c0_25 = arith.constant 0 : index
    %128 = vector.load %arg1[%c0_23, %c0_24, %c0_25] : memref<1x32x128xf32, #tpu.memory_space<vmem>>, vector<1x32x128xf32>
    %129 = vector.shape_cast %128 : vector<1x32x128xf32> to vector<32x128xf32>
    %130 = vector.broadcast %127 : vector<32x1xf32> to vector<32x128xf32>
    %131 = arith.mulf %130, %129 : vector<32x128xf32>
    %c0_26 = arith.constant 0 : index
    %c0_27 = arith.constant 0 : index
    %c0_28 = arith.constant 0 : index
    %132 = vector.load %arg7[%c0_26, %c0_27, %c0_28] : memref<1x32x128xf32, #tpu.memory_space<vmem>>, vector<1x32x128xf32>
    %133 = vector.shape_cast %132 : vector<1x32x128xf32> to vector<32x128xf32>
    %134 = vector.shape_cast %131 : vector<32x128xf32> to vector<1x32x128xf32>
    tpu.vector_store %arg7[%c0_26, %c0_27, %c0_28], %134 {strides = array<i32>} : memref<1x32x128xf32, #tpu.memory_space<vmem>>, vector<1x32x128xf32>,
    return
  }
  func.func @transform_0(%arg0: i32) -> (i32, i32, i32) {
    %c0_i32 = arith.constant 0 : i32
    %c0_i32_0 = arith.constant 0 : i32
    %c0_i32_1 = arith.constant 0 : i32
    return %arg0, %c0_i32, %c0_i32_0 : i32, i32, i32
  }
  func.func @transform_1(%arg0: i32) -> (i32, i32) {
    %c0_i32 = arith.constant 0 : i32
    %c0_i32_0 = arith.constant 0 : i32
    %c0_i32_1 = arith.constant 0 : i32
    return %c0_i32, %c0_i32_0 : i32, i32
  }
  func.func @transform_2(%arg0: i32) -> (i32, i32) {
    %c0_i32 = arith.constant 0 : i32
    %c0_i32_0 = arith.constant 0 : i32
    %c0_i32_1 = arith.constant 0 : i32
    return %c0_i32, %c0_i32_0 : i32, i32
  }
  func.func @transform_3(%arg0: i32) -> (i32, i32) {
    %c0_i32 = arith.constant 0 : i32
    %c0_i32_0 = arith.constant 0 : i32
    %c0_i32_1 = arith.constant 0 : i32
    return %c0_i32, %c0_i32_0 : i32, i32
  }
  func.func @transform_4(%arg0: i32) -> (i32, i32) {
    %c0_i32 = arith.constant 0 : i32
    %c0_i32_0 = arith.constant 0 : i32
    %c0_i32_1 = arith.constant 0 : i32
    return %c0_i32, %c0_i32_0 : i32, i32
  }
  func.func @transform_5(%arg0: i32) -> (i32, i32) {
    %c0_i32 = arith.constant 0 : i32
    %c0_i32_0 = arith.constant 0 : i32
    %c0_i32_1 = arith.constant 0 : i32
    return %c0_i32, %c0_i32_0 : i32, i32
  }
  func.func @transform_6(%arg0: i32) -> (i32, i32, i32) {
    %c0_i32 = arith.constant 0 : i32
    %c0_i32_0 = arith.constant 0 : i32
    %c0_i32_1 = arith.constant 0 : i32
    return %arg0, %c0_i32, %c0_i32_0 : i32, i32, i32
  }
}

</mosaic_0001>

<bundles_post_ra>
// kernel: tpu_custom_call.1
= control target key start
LH: loop header
LB: loop body
LE: loop exit
PB: predicated region body
PF: predicated region fallthrough
CT: control target
= control target key end

     0   :  { %11 = vsyncpa [#allocation3], 0  ;;  %s1783_s0 = inlined_call_operand.vmem [shape: f32[2,32,128], index: 0, kind: input, shape index: {}]   ;;  %s1784_s1 = inlined_call_operand.vmem [shape: f32[41,32], index: 1, kind: input, shape index: {}]   ;;  %s1785_s2 = inlined_call_operand.vmem [shape: f32[4,32], index: 2, kind: input, shape index: {}]   ;;  %s1786_s3 = inlined_call_operand.vmem [shape: f32[32,4], index: 3, kind: input, shape index: {}]   ;;  %s1787_s4 = inlined_call_operand.vmem [shape: f32[4,1], index: 4, kind: input, shape index: {}]   ;;  %s1788_s5 = inlined_call_operand.vmem [shape: f32[4,1], index: 5, kind: input, shape index: {}]   ;;  %s1789_s6 = inlined_call_operand.hbm [shape: f32[2,32,128], index: 6, kind: output, shape index: {}]  }
   0x1   :  { %13 = vsyncpa [#allocation3 + $0x1], 0  ;;  %s1500_s21 = smov 0   ;;  %s1502_s22 = smov 0  }
   0x2   :  { %s1504_s23 = smov 0   ;;  %s1506_s24 = smov 0  }
   0x3 LB: > { %s1521_s25 = sadd.s32 4294967295, %s1415_s24   ;;  %s1153_s26 = sadd.s32 4294967294, %s1415_s24   ;;  %s1415_s24 = sphi %s1506_s24, %s1795_s24   ;;  %s1411_s23 = sphi %s1504_s23, %s1794_s23   ;;  %s1407_s22 = sphi %s1502_s22, %s1793_s22   ;;  %s1403_s21 = sphi %s1500_s21, %s1792_s21  }
   0x4   : > { %s1525_s27 = sadd.s32 1, %s1415_s24   ;;  %s157_s28 = sadd.s32 1, %s1411_s23 }
   0x5   : > { %s154_s29 = ssub.s32 %s1415_s24, %s1525_s27  ;;  %p167_p0 = scmp.ne.s32.totalorder %s1411_s23, %s1407_s22 }
   0x6   : > { %p155_p1 = scmp.eq.s32.totalorder %s154_s29, 0  ;;  %p168_p2 = scmp.eq.s32.totalorder %s1521_s25, 1 }
   0x7   : > { %p173_p3 = scmp.ne.s32.totalorder %s1407_s22, %s1403_s21  ;;  %p174_p4 = scmp.eq.s32.totalorder %s1153_s26, 1 }
   0x8   : > { %s1536_s30 = scalar_select %p155_p1, %s1411_s23, %s157_s28  }
   0x9   : > { %p1538_p5 = por %p168_p2, %p167_p0  ;;  %p1542_p6 = por %p174_p4, %p173_p3 }
   0xa   : > { %p1156_p7 = scmp.ge.s32.totalorder %s1415_s24, 1  ;;  %p215_p8 = scmp.lt.s32.totalorder %s1415_s24, 3 }
   0xc   : > { %p216_p9 = pnand %p1156_p7, %p215_p8 }
   0xd   : > { %p245_p10 = scmp.lt.s32.totalorder (!%p216_p9), %s1521_s25, 1  ;;  %v250_v0 = vld [vmem:[%s1784_s1] sm:$0xff] (!%p216_p9)  ;;  %vm260_vm0 = vcmask (!%p216_p9), 261120   ;;  %v251_v7 = vld [vmem:[%s1784_s1 + $0x8] sm:$0xff] (!%p216_p9)  ;;  %v252_v8 = vld [vmem:[%s1784_s1 + $0x10] sm:$0xff] (!%p216_p9)  ;;  %vm398_vm1 = vcmask (!%p216_p9), 162816  }
   0xe   : > { %219 = sbr.rel (%p216_p9) target bundleno = 1484 (0x5cc), region = 44  ;;  %1209 = vmatprep.mubr.msk.f32.mxu0 (!%p216_p9), %vm260_vm0, %v250_v0  ;;  %v253_v9 = vld [vmem:[%s1784_s1 + $0x18] sm:$0xff] (!%p216_p9)  ;;  %v254_v10 = vld [vmem:[%s1784_s1 + $0x20] sm:$0xff] (!%p216_p9)  ;;  %v255_v11 = vld [vmem:[%s1784_s1 + $0x28] sm:$0x1] (!%p216_p9)  ;;  %s1419_s13 = smov (!%p216_p9), 119  }
   0xf   : > { %s1420_s14 = smov (!%p216_p9), 118   ;;  %s1421_s16 = smov (!%p216_p9), 117   ;;  %vm489_vm2 = vcmask (!%p216_p9), 982016   ;;  %vm499_vm3 = vcmask (!%p216_p9), 973824   ;;  %vm509_vm4 = vcmask (!%p216_p9), 965632   ;;  %vm519_vm5 = vcmask (!%p216_p9), 957440  }
  0x10   : > { %s1422_s17 = smov (!%p216_p9), 116   ;;  %s1423_s18 = smov (!%p216_p9), 115   ;;  %vm529_vm6 = vcmask (!%p216_p9), 949248   ;;  %vm539_vm7 = vcmask (!%p216_p9), 941056   ;;  %vm549_vm8 = vcmask (!%p216_p9), 932864   ;;  %vm559_vm9 = vcmask (!%p216_p9), 924672  }
  0x11   : > { %s1424_s19 = smov (!%p216_p9), 114   ;;  %s1425_s20 = smov (!%p216_p9), 113   ;;  %vm419_vm10 = vcmask (!%p216_p9), 1039360   ;;  %vm429_vm11 = vcmask (!%p216_p9), 1031168   ;;  %vm439_vm12 = vcmask (!%p216_p9), 1022976   ;;  %vm449_vm13 = vcmask (!%p216_p9), 1014784  }
  0x12   : > { %s1426_s26 = smov (!%p216_p9), 127   ;;  %s1427_s28 = smov (!%p216_p9), 126   ;;  %vm459_vm14 = vcmask (!%p216_p9), 1006592   ;;  %vm469_vm15 = vcmask (!%p216_p9), 998400  }
  0x13   : > { %s1428_s29 = smov (!%p216_p9), 125   ;;  %s1429_s9 = smov (!%p216_p9), 124  }
  0x14   : > { %s1430_s10 = smov (!%p216_p9), 123  }
  0x15   : > { %s246_s11 = scalar_select %p245_p10, %s1521_s25, 1 }
  0x17   : > { %s1179_s12 = sshll.u32 %s246_s11, 5  ;;  %s1417_s11 = smov 20  }
  0x18   : > { %s1557_s15 = scalar_lea.vmem %s1783_s0, %s1179_s12  ;;  %s1418_s12 = smov 120  }
  0x19   : > { %v1560_v1 = vld [vmem:[%s1557_s15] sm:$0xff]  ;;  %v1563_v2 = vld [vmem:[%s1557_s15 + $0x8] sm:$0xff]  ;;  %v1566_v3 = vld [vmem:[%s1557_s15 + $0x10] sm:$0xff] }
  0x1a   : > { %v1237_v4 = vpack.c.bf16 %v1563_v2, %v1560_v1  ;;  %v1571_v5 = vld [vmem:[%s1557_s15 + $0x18] sm:$0xff] }
  0x1b   : > { %v1241_v6 = vpack.c.bf16 %v1571_v5, %v1566_v3 }
  0x1c   : > { %1238 = vmatprep.subr.bf16.mxu0 %v1237_v4 }
  0x1d   : > { %1240 = vmatpush3.bf16.msra.mxu0 %v1237_v4 }
  0x1e   : > { %1242 = vmatprep.subr.bf16.mxu0 %v1241_v6 }
  0x21   : > { %1244 = vmatpush3.bf16.msra.mxu0 %v1241_v6 }
  0x24   : > { %1210 = vmatmul.mubr.msk.f32.vlgmr.msra.gmra.mrb[0].mxu0 %vm260_vm0, %v251_v7 }
  0x25   : > { %1212 = vmatprep.mubr.msk.f32.mxu0 %vm260_vm0, %v252_v8 }
  0x28   : > { %1213 = vmatmul.mubr.msk.f32.gmra.mrb[2].mxu0 %vm260_vm0, %v253_v9 }
  0x29   : > { %1215 = vmatprep.mubr.msk.f32.mxu0 %vm260_vm0, %v254_v10 }
  0x2c   : > { %1216 = vmatmul.mubr.msk.f32.gmra.mrb[4].mxu0 %vm260_vm0, %v255_v11 }
  0xf7   : > { %v1211_v12 = vpop.f32.mrb[0].mxu0 }
  0xf8   : > { %382 = vrot.lane.b32.xlu0 %v1211_v12, %s1417_s11  ;;  %v345_v13 = vpop.f32.mrb[1].mxu0 }
  0xfb   : > { %v1214_v14 = vpop.f32.mrb[2].mxu0 }
  0xfc   : > { %380 = vrot.lane.b32.xlu0 %v345_v13, %s1417_s11  ;;  %386 = vrot.lane.b32.xlu1 %v1214_v14, %s1417_s11  ;;  %v355_v15 = vpop.f32.mrb[3].mxu0 }
  0xff   : > { %v1217_v16 = vpop.f32.mrb[4].mxu0 }
 0x100   : > { %384 = vrot.lane.b32.xlu1 %v355_v15, %s1417_s11  ;;  %v365_v17 = vpop.f32.mrb[5].mxu0 }
 0x101   : > { %388 = vrot.lane.b32.xlu0 %v365_v17, %s1417_s11 }
 0x104   : > { %390 = vrot.lane.b32.xlu1 %v1217_v16, %s1417_s11  ;;  %s1431_s11 = smov 122  }
 0x16a   : > { %v383_v18 = vpop.permute.xlu0 %382 }
 0x16b   : > { %v400_v19 = vsel %vm398_vm1, 0.0, %v383_v18  ;;  %v406_v20 = vsel %vm398_vm1, %v383_v18, 0.0 }
 0x16c   : > { %485 = vrot.lane.b32.xlu1 %v400_v19, %s1418_s12  ;;  %487 = vrot.lane.b32.xlu0 %v406_v20, %s1418_s12  ;;  %v493_v21 = vrot.slane %v400_v19, 1  ;;  %v494_v22 = vrot.slane %v406_v20, 1  ;;  %v503_v23 = vrot.slane %v400_v19, 2  ;;  %v504_v24 = vrot.slane %v406_v20, 2  ;;  %s1432_s12 = smov 121  }
 0x16d   : > { %v514_v25 = vrot.slane %v406_v20, 3  ;;  %v513_v26 = vrot.slane %v400_v19, 3  ;;  %v524_v27 = vrot.slane %v406_v20, 4  ;;  %v523_v28 = vrot.slane %v400_v19, 4 }
 0x16e   : > { %v534_v29 = vrot.slane %v406_v20, 5  ;;  %v533_v30 = vrot.slane %v400_v19, 5  ;;  %v544_v31 = vrot.slane %v406_v20, 6  ;;  %v543_v32 = vrot.slane %v400_v19, 6  ;;  %v381_v33 = vpop.permute.xlu0 %380  ;;  %v387_v50 = vpop.permute.xlu1 %386 }
 0x16f   : > { %v554_v34 = vrot.slane %v406_v20, 7  ;;  %v553_v35 = vrot.slane %v400_v19, 7  ;;  %v1598_v36 = vsel %vm398_vm1, 0.0, %v381_v33  ;;  %v405_v37 = vsel %vm398_vm1, %v381_v33, 0.0 }
 0x170   : > { %495 = vrot.lane.b32.xlu1 %v493_v21, %s1419_s13  ;;  %497 = vrot.lane.b32.xlu0 %v494_v22, %s1419_s13  ;;  %v414_v38 = vrot.slane %v405_v37, 1  ;;  %v413_v39 = vrot.slane %v1598_v36, 1  ;;  %v424_v40 = vrot.slane %v405_v37, 2  ;;  %v423_v41 = vrot.slane %v1598_v36, 2  ;;  %s1433_s13 = smov 104  }
 0x171   : > { %v433_v42 = vrot.slane %v1598_v36, 3  ;;  %v434_v43 = vrot.slane %v405_v37, 3  ;;  %v443_v44 = vrot.slane %v1598_v36, 4  ;;  %v444_v45 = vrot.slane %v405_v37, 4 }
 0x172   : > { %v453_v46 = vrot.slane %v1598_v36, 5  ;;  %v454_v47 = vrot.slane %v405_v37, 5  ;;  %v463_v48 = vrot.slane %v1598_v36, 6  ;;  %v464_v49 = vrot.slane %v405_v37, 6  ;;  %v385_v55 = vpop.permute.xlu1 %384 }
 0x173   : > { %v473_v51 = vrot.slane %v1598_v36, 7  ;;  %v474_v52 = vrot.slane %v405_v37, 7  ;;  %v402_v53 = vsel %vm398_vm1, 0.0, %v387_v50  ;;  %v408_v54 = vsel %vm398_vm1, %v387_v50, 0.0  ;;  %v389_v21 = vpop.permute.xlu0 %388 }
 0x174   : > { %505 = vrot.lane.b32.xlu1 %v503_v23, %s1420_s14  ;;  %507 = vrot.lane.b32.xlu0 %v504_v24, %s1420_s14  ;;  %v1611_v56 = vsel %vm398_vm1, 0.0, %v385_v55  ;;  %v1614_v57 = vsel %vm398_vm1, %v385_v55, 0.0  ;;  %s1434_s14 = smov 112   ;;  %v654_v58 = vrot.slane %v408_v54, 1  ;;  %v653_v59 = vrot.slane %v402_v53, 1 }
 0x175   : > { %v664_v60 = vrot.slane %v408_v54, 2  ;;  %v663_v61 = vrot.slane %v402_v53, 2  ;;  %v674_v62 = vrot.slane %v408_v54, 3  ;;  %v673_v63 = vrot.slane %v402_v53, 3 }
 0x176   : > { %v684_v0 = vrot.slane %v408_v54, 4  ;;  %v683_v4 = vrot.slane %v402_v53, 4  ;;  %v694_v6 = vrot.slane %v408_v54, 5  ;;  %v693_v7 = vrot.slane %v402_v53, 5  ;;  %v1626_v20 = vpop.permute.xlu1 %390 }
 0x177   : > { %v704_v8 = vrot.slane %v408_v54, 6  ;;  %v703_v9 = vrot.slane %v402_v53, 6  ;;  %v714_v10 = vrot.slane %v408_v54, 7  ;;  %v713_v11 = vrot.slane %v402_v53, 7 }
 0x178   : > { %517 = vrot.lane.b32.xlu1 %v514_v25, %s1421_s16  ;;  %515 = vrot.lane.b32.xlu0 %v513_v26, %s1421_s16  ;;  %s1435_s16 = smov 103   ;;  %v574_v12 = vrot.slane %v1614_v57, 1  ;;  %v573_v13 = vrot.slane %v1611_v56, 1  ;;  %v584_v14 = vrot.slane %v1614_v57, 2  ;;  %v583_v15 = vrot.slane %v1611_v56, 2 }
 0x179   : > { %v594_v16 = vrot.slane %v1614_v57, 3  ;;  %v593_v17 = vrot.slane %v1611_v56, 3  ;;  %v604_v18 = vrot.slane %v1614_v57, 4  ;;  %v603_v19 = vrot.slane %v1611_v56, 4 }
 0x17a   : > { %v614_v22 = vrot.slane %v1614_v57, 5  ;;  %v613_v23 = vrot.slane %v1611_v56, 5  ;;  %v624_v26 = vrot.slane %v1614_v57, 6  ;;  %v1639_v37 = vsel %vm398_vm1, 0.0, %v389_v21 }
 0x17c   : > { %527 = vrot.lane.b32.xlu1 %v524_v27, %s1422_s17  ;;  %525 = vrot.lane.b32.xlu0 %v523_v28, %s1422_s17  ;;  %s1436_s17 = smov 102   ;;  %v623_v27 = vrot.slane %v1611_v56, 6 }
 0x180   : > { %537 = vrot.lane.b32.xlu1 %v534_v29, %s1423_s18  ;;  %535 = vrot.lane.b32.xlu0 %v533_v30, %s1423_s18  ;;  %s1437_s18 = smov 101  }
 0x184   : > { %547 = vrot.lane.b32.xlu1 %v544_v31, %s1424_s19  ;;  %545 = vrot.lane.b32.xlu0 %v543_v32, %s1424_s19  ;;  %s1438_s19 = smov 100   ;;  %v634_v31 = vrot.slane %v1614_v57, 7  ;;  %v633_v32 = vrot.slane %v1611_v56, 7 }
 0x188   : > { %557 = vrot.lane.b32.xlu1 %v554_v34, %s1425_s20  ;;  %555 = vrot.lane.b32.xlu0 %v553_v35, %s1425_s20  ;;  %s1439_s20 = smov 99  }
 0x18c   : > { %417 = vrot.lane.b32.xlu1 %v414_v38, %s1426_s26  ;;  %415 = vrot.lane.b32.xlu0 %v413_v39, %s1426_s26  ;;  %s1440_s26 = smov 98   ;;  %v409_v38 = vsel %vm398_vm1, %v389_v21, 0.0 }
 0x190   : > { %427 = vrot.lane.b32.xlu1 %v424_v40, %s1427_s28  ;;  %425 = vrot.lane.b32.xlu0 %v423_v41, %s1427_s28  ;;  %s1441_s28 = smov 97  }
 0x194   : > { %435 = vrot.lane.b32.xlu1 %v433_v42, %s1428_s29  ;;  %437 = vrot.lane.b32.xlu0 %v434_v43, %s1428_s29  ;;  %s1442_s29 = smov 111   ;;  %v734_v42 = vrot.slane %v409_v38, 1  ;;  %v733_v43 = vrot.slane %v1639_v37, 1 }
 0x198   : > { %445 = vrot.lane.b32.xlu1 %v443_v44, %s1429_s9  ;;  %447 = vrot.lane.b32.xlu0 %v444_v45, %s1429_s9  ;;  %s1443_s9 = smov 110  }
 0x19c   : > { %455 = vrot.lane.b32.xlu1 %v453_v46, %s1430_s10  ;;  %457 = vrot.lane.b32.xlu0 %v454_v47, %s1430_s10  ;;  %s1444_s10 = smov 109   ;;  %v744_v47 = vrot.slane %v409_v38, 2 }
 0x1a0   : > { %465 = vrot.lane.b32.xlu1 %v463_v48, %s1431_s11  ;;  %467 = vrot.lane.b32.xlu0 %v464_v49, %s1431_s11  ;;  %s1445_s11 = smov 108   ;;  %v743_v48 = vrot.slane %v1639_v37, 2 }
 0x1a4   : > { %475 = vrot.lane.b32.xlu1 %v473_v51, %s1432_s12  ;;  %477 = vrot.lane.b32.xlu0 %v474_v52, %s1432_s12  ;;  %s1446_s12 = smov 107   ;;  %v754_v52 = vrot.slane %v409_v38, 3 }
 0x1a8   : > { %647 = vrot.lane.b32.xlu1 %v408_v54, %s1433_s13  ;;  %645 = vrot.lane.b32.xlu0 %v402_v53, %s1433_s13  ;;  %s1447_s13 = smov 106   ;;  %v753_v53 = vrot.slane %v1639_v37, 3 }
 0x1ac   : > { %567 = vrot.lane.b32.xlu1 %v1614_v57, %s1434_s14  ;;  %565 = vrot.lane.b32.xlu0 %v1611_v56, %s1434_s14  ;;  %s1448_s14 = smov 105   ;;  %v764_v57 = vrot.slane %v409_v38, 4 }
 0x1b0   : > { %657 = vrot.lane.b32.xlu1 %v654_v58, %s1435_s16  ;;  %655 = vrot.lane.b32.xlu0 %v653_v59, %s1435_s16  ;;  %s1449_s16 = smov 96   ;;  %v763_v58 = vrot.slane %v1639_v37, 4 }
 0x1b4   : > { %667 = vrot.lane.b32.xlu1 %v664_v60, %s1436_s17  ;;  %665 = vrot.lane.b32.xlu0 %v663_v61, %s1436_s17  ;;  %s1450_s17 = smov 95  }
 0x1b8   : > { %677 = vrot.lane.b32.xlu1 %v674_v62, %s1437_s18  ;;  %675 = vrot.lane.b32.xlu0 %v673_v63, %s1437_s18  ;;  %s1451_s18 = smov 94   ;;  %v774_v62 = vrot.slane %v409_v38, 5  ;;  %v773_v63 = vrot.slane %v1639_v37, 5 }
 0x1bc   : > { %687 = vrot.lane.b32.xlu1 %v684_v0, %s1438_s19  ;;  %685 = vrot.lane.b32.xlu0 %v683_v4, %s1438_s19  ;;  %s1452_s19 = smov 93  }
 0x1c0   : > { %697 = vrot.lane.b32.xlu1 %v694_v6, %s1439_s20  ;;  %695 = vrot.lane.b32.xlu0 %v693_v7, %s1439_s20  ;;  %s1453_s20 = smov 92   ;;  %v784_v7 = vrot.slane %v409_v38, 6 }
 0x1c4   : > { %707 = vrot.lane.b32.xlu1 %v704_v8, %s1440_s26  ;;  %705 = vrot.lane.b32.xlu0 %v703_v9, %s1440_s26  ;;  %s1454_s26 = smov 91   ;;  %v783_v8 = vrot.slane %v1639_v37, 6 }
 0x1c8   : > { %717 = vrot.lane.b32.xlu1 %v714_v10, %s1441_s28  ;;  %715 = vrot.lane.b32.xlu0 %v713_v11, %s1441_s28  ;;  %s1455_s28 = smov 90   ;;  %v794_v11 = vrot.slane %v409_v38, 7 }
 0x1cc   : > { %577 = vrot.lane.b32.xlu1 %v574_v12, %s1442_s29  ;;  %575 = vrot.lane.b32.xlu0 %v573_v13, %s1442_s29  ;;  %v793_v12 = vrot.slane %v1639_v37, 7  ;;  %s1456_s29 = smov 89  }
 0x1d0   : > { %587 = vrot.lane.b32.xlu1 %v584_v14, %s1443_s9  ;;  %585 = vrot.lane.b32.xlu0 %v583_v15, %s1443_s9  ;;  %v410_v15 = vsel %vm398_vm1, %v1626_v20, 0.0  ;;  %s1457_s9 = smov 88  }
 0x1d4   : > { %597 = vrot.lane.b32.xlu1 %v594_v16, %s1444_s10  ;;  %595 = vrot.lane.b32.xlu0 %v593_v17, %s1444_s10  ;;  %v404_v16 = vsel %vm398_vm1, 0.0, %v1626_v20  ;;  %vm479_vm1 = vcmask 990208   ;;  %s242_s10 = sand.u32 1, %s1407_s22  }
 0x1d8   : > { %607 = vrot.lane.b32.xlu1 %v604_v18, %s1445_s11  ;;  %605 = vrot.lane.b32.xlu0 %v603_v19, %s1445_s11  ;;  %s1157_s11 = sshll.u32 %s242_s10, 5 }
 0x1dc   : > { %617 = vrot.lane.b32.xlu1 %v614_v22, %s1446_s12  ;;  %615 = vrot.lane.b32.xlu0 %v613_v23, %s1446_s12  ;;  %s244_s12 = scalar_lea.vmem [#allocation2], %s1157_s11 }
 0x1de   : > { %v486_v24 = vpop.permute.xlu1 %485  ;;  %v488_v25 = vpop.permute.xlu0 %487 }
 0x1df   : > { %v1632_v28 = vsel %vm489_vm2, %v486_v24, %v488_v25  ;;  %vm649_vm2 = vcmask 850944  }
 0x1e0   : > { %627 = vrot.lane.b32.xlu1 %v624_v26, %s1447_s13  ;;  %625 = vrot.lane.b32.xlu0 %v623_v27, %s1447_s13  ;;  %s1091_s13 = sshll.u32 %s244_s12, 4  ;;  %s1734_s13 = int_to_ptr.vmem [resolvable:$true] %s1091_s13 }
 0x1e2   : > { %v496_v29 = vpop.permute.xlu1 %495  ;;  %v498_v30 = vpop.permute.xlu0 %497 }
 0x1e3   : > { %v1636_v33 = vsel %vm499_vm3, %v496_v29, %v498_v30  ;;  %vm569_vm3 = vcmask 916480  }
 0x1e4   : > { %637 = vrot.lane.b32.xlu1 %v634_v31, %s1448_s14  ;;  %635 = vrot.lane.b32.xlu0 %v633_v32, %s1448_s14  ;;  %s1180_s14 = sshll.u32 %s1521_s25, 9  ;;  %s1462_s25 = smov [#allocation2]  }
 0x1e6   : > { %v506_v34 = vpop.permute.xlu1 %505  ;;  %v508_v35 = vpop.permute.xlu0 %507 }
 0x1e7   : > { %v1642_v39 = vsel %vm509_vm4, %v506_v34, %v508_v35  ;;  %vm579_vm4 = vcmask 908288  }
 0x1e8   : > { %727 = vrot.lane.b32.xlu1 %v409_v38, %s1449_s16  ;;  %725 = vrot.lane.b32.xlu0 %v1639_v37, %s1449_s16 }
 0x1ea   : > { %v518_v40 = vpop.permute.xlu1 %517  ;;  %v516_v41 = vpop.permute.xlu0 %515 }
 0x1eb   : > { %v1646_v44 = vsel %vm519_vm5, %v516_v41, %v518_v40  ;;  %vm589_vm5 = vcmask 900096  }
 0x1ec   : > { %737 = vrot.lane.b32.xlu1 %v734_v42, %s1450_s17  ;;  %735 = vrot.lane.b32.xlu0 %v733_v43, %s1450_s17 }
 0x1ee   : > { %v528_v45 = vpop.permute.xlu1 %527  ;;  %v526_v46 = vpop.permute.xlu0 %525 }
 0x1ef   : > { %v1649_v49 = vsel %vm529_vm6, %v526_v46, %v528_v45  ;;  %vm599_vm6 = vcmask 891904  }
 0x1f0   : > { %747 = vrot.lane.b32.xlu1 %v744_v47, %s1451_s18  ;;  %745 = vrot.lane.b32.xlu0 %v743_v48, %s1451_s18  ;;  %s1740_s18 = scalar_lea.hbm %s1789_s6, %s1180_s14 }
 0x1f2   : > { %v538_v50 = vpop.permute.xlu1 %537  ;;  %v536_v51 = vpop.permute.xlu0 %535 }
 0x1f3   : > { %v1652_v54 = vsel %vm539_vm7, %v536_v51, %v538_v50  ;;  %vm609_vm7 = vcmask 883712  }
 0x1f4   : > { %757 = vrot.lane.b32.xlu1 %v754_v52, %s1452_s19  ;;  %755 = vrot.lane.b32.xlu0 %v753_v53, %s1452_s19  ;;  %s1742_s19 = scalar_lea.sflag [#allocation3], %s242_s10 }
 0x1f6   : > { %v548_v55 = vpop.permute.xlu1 %547  ;;  %v546_v56 = vpop.permute.xlu0 %545 }
 0x1f7   : > { %v1655_v59 = vsel %vm549_vm8, %v546_v56, %v548_v55  ;;  %vm619_vm8 = vcmask 875520  }
 0x1f8   : > { %767 = vrot.lane.b32.xlu1 %v764_v57, %s1453_s20  ;;  %765 = vrot.lane.b32.xlu0 %v763_v58, %s1453_s20  ;;  %s1353_s20 = scalar_lea.vmem %s1734_s13, 512 }
 0x1f9   : > { %p1354_p11 = scmp.ne.s32.totalorder %s1734_s13, %s1353_s20 }
 0x1fa   : > { %v558_v60 = vpop.permute.xlu1 %557  ;;  %v556_v61 = vpop.permute.xlu0 %555 }
 0x1fb   : > { %v1658_v0 = vsel %vm559_vm9, %v556_v61, %v558_v60  ;;  %vm629_vm9 = vcmask 867328   ;;  %p1355_p12 = pnand %p1354_p11, %p1538_p5 }
 0x1fc   : > { %777 = vrot.lane.b32.xlu1 %v774_v62, %s1454_s26  ;;  %775 = vrot.lane.b32.xlu0 %v773_v63, %s1454_s26  ;;  %s1357_s26 = sshll.u32 %s1462_s25, 4  ;;  %s1358_s26 = int_to_ptr.vmem [resolvable:$false] %s1357_s26 }
 0x1fd   : > { %p1356_p13 = pneg %p1355_p12  ;;  %p1360_p0 = scmp.lt.s32.totalorder %s1734_s13, %s1358_s26 }
 0x1fe   : > { %v418_v4 = vpop.permute.xlu1 %417  ;;  %v416_v6 = vpop.permute.xlu0 %415 }
 0x1ff   : > { %v420_v17 = vsel %vm419_vm10, %v416_v6, %v418_v4  ;;  %vm639_vm10 = vcmask 859136  }
 0x200   : > { %787 = vrot.lane.b32.xlu1 %v784_v7, %s1455_s28  ;;  %785 = vrot.lane.b32.xlu0 %v783_v8, %s1455_s28  ;;  %v422_v22 = vadd.f32 %v420_v17, %v1598_v36  ;;  %s1359_s28 = scalar_lea.vmem %s1358_s26, 1024 }
 0x201   : > { %p1361_p1 = scmp.lt.s32.totalorder %s1359_s28, %s1353_s20 }
 0x202   : > { %v428_v9 = vpop.permute.xlu1 %427  ;;  %v426_v10 = vpop.permute.xlu0 %425 }
 0x203   : > { %v430_v21 = vsel %vm429_vm11, %v426_v10, %v428_v9  ;;  %vm659_vm11 = vcmask 842752   ;;  %p1362_p2 = por %p1361_p1, %p1360_p0 }
 0x204   : > { %797 = vrot.lane.b32.xlu1 %v794_v11, %s1456_s29  ;;  %795 = vrot.lane.b32.xlu0 %v793_v12, %s1456_s29  ;;  %v432_v24 = vadd.f32 %v430_v21, %v422_v22 }
 0x205   : > { %p1363_p3 = pnand %p1362_p2, %p1356_p13 }
 0x206   : > { %v436_v13 = vpop.permute.xlu1 %435  ;;  %v438_v14 = vpop.permute.xlu0 %437 }
 0x207   : > { %v440_v23 = vsel %vm439_vm12, %v436_v13, %v438_v14  ;;  %vm669_vm12 = vcmask 834560  }
 0x208   : > { %807 = vrot.lane.b32.xlu1 %v410_v15, %s1457_s9  ;;  %805 = vrot.lane.b32.xlu0 %v404_v16, %s1457_s9  ;;  %v442_v29 = vadd.f32 %v440_v23, %v432_v24 }
 0x20a   : > { %v446_v18 = vpop.permute.xlu1 %445  ;;  %v448_v19 = vpop.permute.xlu0 %447 }
 0x20b   : > { %v450_v27 = vsel %vm449_vm13, %v446_v18, %v448_v19  ;;  %vm679_vm13 = vcmask 826368  }
 0x20c   : > { %v452_v30 = vadd.f32 %v450_v27, %v442_v29 }
 0x20e   : > { %v456_v25 = vpop.permute.xlu1 %455  ;;  %v458_v26 = vpop.permute.xlu0 %457 }
 0x20f   : > { %v460_v20 = vsel %vm459_vm14, %v456_v25, %v458_v26  ;;  %vm689_vm14 = vcmask 818176  }
 0x210   : > { %v462_v35 = vadd.f32 %v460_v20, %v452_v30 }
 0x212   : > { %v466_v31 = vpop.permute.xlu1 %465  ;;  %v468_v32 = vpop.permute.xlu0 %467 }
 0x213   : > { %v470_v34 = vsel %vm469_vm15, %v466_v31, %v468_v32  ;;  %vm699_vm15 = vcmask 809984  }
 0x214   : > { %v472_v37 = vadd.f32 %v470_v34, %v462_v35 }
 0x216   : > { %v476_v38 = vpop.permute.xlu1 %475  ;;  %v478_v40 = vpop.permute.xlu0 %477 }
 0x217   : > { %v480_v36 = vsel %vm479_vm1, %v476_v38, %v478_v40  ;;  %vm709_vm1 = vcmask 801792  }
 0x218   : > { %v482_v41 = vadd.f32 %v480_v36, %v472_v37 }
 0x21a   : > { %v492_v42 = vadd.f32 %v1632_v28, %v482_v41  ;;  %v648_v43 = vpop.permute.xlu1 %647  ;;  %v646_v45 = vpop.permute.xlu0 %645 }
 0x21b   : > { %v1668_v46 = vsel %vm649_vm2, %v646_v45, %v648_v43  ;;  %vm719_vm2 = vcmask 793600  }
 0x21c   : > { %v502_v47 = vadd.f32 %v1636_v33, %v492_v42 }
 0x21e   : > { %v512_v48 = vadd.f32 %v1642_v39, %v502_v47  ;;  %v568_v50 = vpop.permute.xlu1 %567  ;;  %v566_v51 = vpop.permute.xlu0 %565 }
 0x21f   : > { %v570_v12 = vsel %vm569_vm3, %v566_v51, %v568_v50  ;;  %vm729_vm3 = vcmask 785408  }
 0x220   : > { %v522_v52 = vadd.f32 %v1646_v44, %v512_v48 }
 0x222   : > { %v532_v53 = vadd.f32 %v1649_v49, %v522_v52  ;;  %v658_v55 = vpop.permute.xlu1 %657  ;;  %v656_v56 = vpop.permute.xlu0 %655 }
 0x223   : > { %v660_v42 = vsel %vm659_vm11, %v656_v56, %v658_v55  ;;  %vm809_vm11 = vcmask 719872  }
 0x224   : > { %v542_v57 = vadd.f32 %v1652_v54, %v532_v53 }
 0x226   : > { %v552_v28 = vadd.f32 %v1655_v59, %v542_v57  ;;  %v668_v58 = vpop.permute.xlu1 %667  ;;  %v666_v60 = vpop.permute.xlu0 %665 }
 0x227   : > { %v670_v45 = vsel %vm669_vm12, %v666_v60, %v668_v58  ;;  %vm1459_vm12 = vmmov 0  }
 0x228   : > { %v562_v61 = vadd.f32 %v1658_v0, %v552_v28 }
 0x22a   : > { %v678_v62 = vpop.permute.xlu1 %677  ;;  %v676_v33 = vpop.permute.xlu0 %675  ;;  %v572_v14 = vadd.f32 %v570_v12, %v562_v61 }
 0x22b   : > { %v680_v51 = vsel %vm679_vm13, %v676_v33, %v678_v62  ;;  %vm947_vm13 = vcmask 31744  }
 0x22e   : > { %v1677_v63 = vpop.permute.xlu1 %687  ;;  %v686_v39 = vpop.permute.xlu0 %685 }
 0x22f   : > { %v690_v53 = vsel %vm689_vm14, %v686_v39, %v1677_v63  ;;  %vm909_vm14 = vcmask 3072  }
 0x232   : > { %v1679_v4 = vpop.permute.xlu1 %697  ;;  %v1681_v44 = vpop.permute.xlu0 %695 }
 0x236   : > { %v1683_v49 = vpop.permute.xlu1 %707  ;;  %v1685_v6 = vpop.permute.xlu0 %705 }
 0x237   : > { %v710_v56 = vsel %vm709_vm1, %v1685_v6, %v1683_v49 }
 0x23a   : > { %v1687_v54 = vpop.permute.xlu1 %717  ;;  %v1689_v59 = vpop.permute.xlu0 %715 }
 0x23b   : > { %v720_v33 = vsel %vm719_vm2, %v1689_v59, %v1687_v54 }
 0x23e   : > { %v578_v7 = vpop.permute.xlu1 %577  ;;  %v576_v8 = vpop.permute.xlu0 %575 }
 0x23f   : > { %v580_v13 = vsel %vm579_vm4, %v576_v8, %v578_v7  ;;  %vm739_vm4 = vcmask 777216  }
 0x240   : > { %v582_v18 = vadd.f32 %v580_v13, %v572_v14 }
 0x242   : > { %v588_v0 = vpop.permute.xlu1 %587  ;;  %v586_v9 = vpop.permute.xlu0 %585 }
 0x243   : > { %v590_v17 = vsel %vm589_vm5, %v586_v9, %v588_v0  ;;  %vm749_vm5 = vcmask 769024  }
 0x244   : > { %v592_v21 = vadd.f32 %v590_v17, %v582_v18 }
 0x246   : > { %v598_v10 = vpop.permute.xlu1 %597  ;;  %v596_v11 = vpop.permute.xlu0 %595 }
 0x247   : > { %v600_v19 = vsel %vm599_vm6, %v596_v11, %v598_v10  ;;  %vm759_vm6 = vcmask 760832  }
 0x248   : > { %v602_v25 = vadd.f32 %v600_v19, %v592_v21 }
 0x24a   : > { %v608_v15 = vpop.permute.xlu1 %607  ;;  %v606_v16 = vpop.permute.xlu0 %605 }
 0x24b   : > { %v610_v24 = vsel %vm609_vm7, %v606_v16, %v608_v15  ;;  %vm769_vm7 = vcmask 752640  }
 0x24c   : > { %v612_v27 = vadd.f32 %v610_v24, %v602_v25 }
 0x24e   : > { %v618_v22 = vpop.permute.xlu1 %617  ;;  %v616_v23 = vpop.permute.xlu0 %615 }
 0x24f   : > { %v620_v26 = vsel %vm619_vm8, %v616_v23, %v618_v22  ;;  %vm779_vm8 = vcmask 744448  }
 0x250   : > { %v622_v31 = vadd.f32 %v620_v26, %v612_v27 }
 0x252   : > { %v628_v29 = vpop.permute.xlu1 %627  ;;  %v626_v20 = vpop.permute.xlu0 %625 }
 0x253   : > { %v630_v30 = vsel %vm629_vm9, %v626_v20, %v628_v29  ;;  %vm789_vm9 = vcmask 736256  }
 0x254   : > { %v632_v32 = vadd.f32 %v630_v30, %v622_v31  ;;  %v819_v31 = vlaneseq }
 0x256   : > { %v638_v34 = vpop.permute.xlu1 %637  ;;  %v636_v35 = vpop.permute.xlu0 %635 }
 0x257   : > { %v640_v37 = vsel %vm639_vm10, %v636_v35, %v638_v34  ;;  %vm799_vm10 = vcmask 728064  }
 0x258   : > { %v642_v38 = vadd.f32 %v640_v37, %v632_v32  ;;  %v820_v32 = vshrl.u32 %v819_v31, 7 }
 0x25a   : > { %v652_v40 = vadd.f32 %v1668_v46, %v642_v38  ;;  %v728_v36 = vpop.permute.xlu1 %727  ;;  %v726_v41 = vpop.permute.xlu0 %725  ;;  %v700_v46 = vsel %vm699_vm15, %v1681_v44, %v1679_v4  ;;  %v821_v34 = vsub.s32 0, %v820_v32 }
 0x25b   : > { %v730_v39 = vsel %vm729_vm3, %v726_v41, %v728_v36 }
 0x25c   : > { %v662_v43 = vadd.f32 %v660_v42, %v652_v40  ;;  %v1458_v42 = vmov 0.0|0.0  }
 0x25d   : > { %1245 = vmatprep.subr.bf16.mxu1 %v1458_v42 }
 0x25e   : > { %v672_v47 = vadd.f32 %v670_v45, %v662_v43  ;;  %v738_v48 = vpop.permute.xlu1 %737  ;;  %v736_v50 = vpop.permute.xlu0 %735  ;;  %v1460_v43 = vmov 0.0  }
 0x25f   : > { %v740_v4 = vsel %vm739_vm4, %v736_v50, %v738_v48  ;;  %1226 = vmatprep.mubr.msk.f32.mxu1 %vm1459_vm12, %v1460_v43 }
 0x260   : > { %v682_v52 = vadd.f32 %v680_v51, %v672_v47 }
 0x262   : > { %v692_v57 = vadd.f32 %v690_v53, %v682_v52  ;;  %v748_v28 = vpop.permute.xlu1 %747  ;;  %v746_v61 = vpop.permute.xlu0 %745 }
 0x263   : > { %v750_v9 = vsel %vm749_vm5, %v746_v61, %v748_v28 }
 0x264   : > { %v702_v55 = vadd.f32 %v700_v46, %v692_v57 }
 0x266   : > { %v712_v58 = vadd.f32 %v710_v56, %v702_v55  ;;  %v758_v60 = vpop.permute.xlu1 %757  ;;  %v756_v62 = vpop.permute.xlu0 %755 }
 0x267   : > { %v760_v11 = vsel %vm759_vm6, %v756_v62, %v758_v60 }
 0x268   : > { %v722_v63 = vadd.f32 %v720_v33, %v712_v58 }
 0x26a   : > { %v732_v7 = vadd.f32 %v730_v39, %v722_v63  ;;  %v768_v8 = vpop.permute.xlu1 %767  ;;  %v766_v0 = vpop.permute.xlu0 %765 }
 0x26b   : > { %v770_v13 = vsel %vm769_vm7, %v766_v0, %v768_v8 }
 0x26c   : > { %v742_v44 = vadd.f32 %v740_v4, %v732_v7 }
 0x26e   : > { %v752_v10 = vadd.f32 %v750_v9, %v742_v44  ;;  %v778_v49 = vpop.permute.xlu1 %777  ;;  %v776_v6 = vpop.permute.xlu0 %775 }
 0x26f   : > { %v780_v15 = vsel %vm779_vm8, %v776_v6, %v778_v49  ;;  %v932_v49 = vld [vmem:[%s1787_s4] sm:$0xf] }
 0x270   : > { %v762_v12 = vadd.f32 %v760_v11, %v752_v10  ;;  %v934_v11 = vld [vmem:[%s1788_s5] sm:$0xf] }
 0x272   : > { %v772_v54 = vadd.f32 %v770_v13, %v762_v12  ;;  %v788_v59 = vpop.permute.xlu1 %787  ;;  %v786_v14 = vpop.permute.xlu0 %785 }
 0x273   : > { %v790_v17 = vsel %vm789_vm9, %v786_v14, %v788_v59 }
 0x274   : > { %v782_v16 = vadd.f32 %v780_v15, %v772_v54 }
 0x276   : > { %v792_v18 = vadd.f32 %v790_v17, %v782_v16  ;;  %v798_v19 = vpop.permute.xlu1 %797  ;;  %v796_v21 = vpop.permute.xlu0 %795  ;;  %v944_v17 = vld [vmem:[%s1786_s3 + $0x8] sm:$0xff] }
 0x277   : > { %v800_v22 = vsel %vm799_vm10, %v796_v21, %v798_v19  ;;  %v946_v19 = vld [vmem:[%s1786_s3 + $0x18] sm:$0xff]  ;;  %v1461_v21 = vmov 0  }
 0x278   : > { %v802_v23 = vadd.f32 %v800_v22, %v792_v18  ;;  %v945_v18 = vld [vmem:[%s1786_s3 + $0x10] sm:$0xff]  ;;  %1337 = vset.pattern.permute.xlu1 %v1461_v21  ;;  %1338 = vset.pattern.permute.xlu0 %v1461_v21 }
 0x27a   : > { %v808_v24 = vpop.permute.xlu1 %807  ;;  %v806_v25 = vpop.permute.xlu0 %805 }
 0x27b   : > { %v810_v26 = vsel %vm809_vm11, %v806_v25, %v808_v24 }
 0x27c   : > { %v812_v27 = vadd.f32 %v810_v26, %v802_v23 }
 0x27e   : > { %v1166_v29 = vmul.f32 -1.442695, %v812_v27 }
 0x280   : > { %1339 = vpow2.f32 %v1166_v29  ;;  %v1349_v29 = vld [vmem:[%s1557_s15 + $0x8] sm:$0xff] }
 0x28a   : > { %v1340_v20 = vpop.eup %1339 }
 0x28b   : > { %v816_v30 = vadd.f32 1.0, %v1340_v20 }
 0x28d   : > { %1341 = vrcp.f32 %v816_v30  ;;  %v1350_v30 = vld [vmem:[%s1557_s15] sm:$0xff] }
 0x297   : > { %v1342_v35 = vpop.eup %1341 }
 0x298   : > { %v822_v37 = vrot.slane %v1342_v35, %v821_v34  ;;  %v1351_v34 = vld [vmem:[%s1557_s15 + $0x10] sm:$0xff] }
 0x29a   : > { %v824_v38 = vmul.f32 %v822_v37, %v1563_v2  ;;  %v823_v40 = vmul.f32 %v822_v37, %v1560_v1  ;;  %v825_v36 = vmul.f32 %v822_v37, %v1566_v3  ;;  %v826_v41 = vmul.f32 %v822_v37, %v1571_v5  ;;  %v835_v3 = vld [vmem:[%s1785_s2] sm:$0xf] }
 0x29b   : > { %v943_v5 = vld [vmem:[%s1786_s3] sm:$0xff] }
 0x29c   : > { %829 = vadd.xlane.f32.xlu1 %v824_v38  ;;  %827 = vadd.xlane.f32.xlu0 %v823_v40  ;;  %v1352_v38 = vld [vmem:[%s1557_s15 + $0x18] sm:$0xff] }
 0x2a0   : > { %831 = vadd.xlane.f32.xlu0 %v825_v36 }
 0x2a4   : > { %833 = vadd.xlane.f32.xlu0 %v826_v41 }
 0x329   : > { %v830_v45 = vpop.xlane.xlu1 %829  ;;  %v828_v47 = vpop.xlane.xlu0 %827 }
 0x32a   : > { %v1246_v48 = vpack.c.bf16 %v830_v45, %v828_v47 }
 0x32c   : > { %1247 = vmatpush3.bf16.msra.mxu1 %v1246_v48 }
 0x32d   : > { %v832_v2 = vpop.xlane.xlu0 %831  ;;  %1248 = vmatprep.subr.bf16.mxu1 %v1458_v42 }
 0x331   : > { %v834_v1 = vpop.xlane.xlu0 %833 }
 0x332   : > { %v1249_v50 = vpack.c.bf16 %v834_v1, %v832_v2 }
 0x334   : > { %1250 = vmatpush3.bf16.msra.mxu1 %v1249_v50 }
 0x337   : > { %1227 = vmatmul.mubr.msk.f32.vlgmr.msra.gmra.mrb[0].mxu1 %vm260_vm0, %v835_v3  ;;  %vm960_vm0 = vcmask 1043456  }
 0x338   : > { %1231 = vmatprep.mubr.msk.f32.mxu1 %vm947_vm13, %v943_v5 }
 0x40a   : > { %v905_v51 = vpop.f32.mrb[0].mxu1 }
 0x40b   : > { %v910_v52 = vsel %vm909_vm14, %v905_v51, 0.0  ;;  %v1228_v53 = vpop.f32.mrb[1].mxu1 }
 0x40c   : > { %v911_v57 = vrot.slane %v910_v52, 4 }
 0x40e   : > { %v912_v28 = vadd.f32 %v911_v57, %v910_v52 }
 0x410   : > { %v913_v61 = vrot.slane %v912_v28, 2 }
 0x412   : > { %v914_v46 = vadd.f32 %v913_v61, %v912_v28 }
 0x414   : > { %v915_v55 = vrot.slane %v914_v46, 1 }
 0x416   : > { %v916_v56 = vadd.f32 %v915_v55, %v914_v46 }
 0x418   : > { %v918_v58 = vmul.f32 0.25, %v916_v56 }
 0x41a   : > { %v919_v60 = vsub.f32 %v905_v51, %v918_v58 }
 0x41c   : > { %v920_v62 = vmul.f32 %v919_v60, %v919_v60 }
 0x41e   : > { %v921_v33 = vsel %vm909_vm14, %v920_v62, 0.0 }
 0x41f   : > { %v922_v63 = vrot.slane %v921_v33, 4 }
 0x421   : > { %v923_v39 = vadd.f32 %v922_v63, %v921_v33 }
 0x423   : > { %v924_v7 = vrot.slane %v923_v39, 2 }
 0x425   : > { %v925_v8 = vadd.f32 %v924_v7, %v923_v39 }
 0x427   : > { %v926_v0 = vrot.slane %v925_v8, 1 }
 0x429   : > { %v927_v4 = vadd.f32 %v926_v0, %v925_v8 }
 0x42b   : > { %v928_v44 = vmul.f32 0.25, %v927_v4 }
 0x42d   : > { %v929_v9 = vadd.f32 1e-05, %v928_v44 }
 0x42f   : > { %1343 = vrsqrt.f32 %v929_v9 }
 0x439   : > { %v1344_v10 = vpop.eup %1343 }
 0x43a   : > { %v931_v6 = vmul.f32 %v1344_v10, %v919_v60 }
 0x43c   : > { %v933_v12 = vmul.f32 %v932_v49, %v931_v6 }
 0x43e   : > { %v935_v13 = vadd.f32 %v934_v11, %v933_v12 }
 0x440   : > { %v1168_v54 = vmul.f32 -1.442695, %v935_v13 }
 0x442   : > { %1345 = vpow2.f32 %v1168_v54 }
 0x44c   : > { %v1346_v59 = vpop.eup %1345 }
 0x44d   : > { %v939_v14 = vadd.f32 1.0, %v1346_v59 }
 0x44f   : > { %1347 = vrcp.f32 %v939_v14 }
 0x459   : > { %v1348_v15 = vpop.eup %1347 }
 0x45a   : > { %v942_v16 = vmul.f32 %v1348_v15, %v935_v13 }
 0x45c   : > { %1229 = vmatprep.subr.msk.mxu1 %vm960_vm0, %v942_v16 }
 0x45d   : > { %1230 = vmatpush3.msk.msra.mxu1 %vm960_vm0, %v942_v16 }
 0x45e   : > { %1232 = vmatmul.mubr.msk.f32.vlgmr.msra.gmra.mrb[2].mxu1 %vm947_vm13, %v944_v17 }
 0x45f   : > { %1234 = vmatprep.mubr.msk.f32.mxu1 %vm947_vm13, %v945_v18 }
 0x462   : > { %1235 = vmatmul.mubr.msk.f32.gmra.mrb[4].mxu1 %vm947_vm13, %v946_v19 }
 0x531   : > { %v1233_v22 = vpop.f32.mrb[2].mxu1 }
 0x532   : > { %v1030_v23 = vpop.f32.mrb[3].mxu1  ;;  %1056 = vperm.xlu0 %1338, %v1233_v22  }
 0x533   : > { %1051 = vperm.xlu1 %1337, %v1030_v23  }
 0x535   : > { %v1236_v24 = vpop.f32.mrb[4].mxu1 }
 0x536   : > { %v1040_v25 = vpop.f32.mrb[5].mxu1 }
 0x537   : > { %1061 = vperm.xlu1 %1337, %v1040_v25  }
 0x53b   : > { %1066 = vperm.xlu1 %1337, %v1236_v24  }
 0x5b1   : > { %v1057_v26 = vpop.permute.xlu0 %1056 }
 0x5b2   : > { %v1052_v27 = vpop.permute.xlu1 %1051  ;;  %v1070_v20 = vmul.f32 %v1349_v29, %v1057_v26 }
 0x5b3   : > { %v1069_v31 = vmul.f32 %v1350_v30, %v1052_v27 }
 0x5b4   : > { %1074 = vst [vmem:[%s244_s12 + $0x8] sm:$0xff] %v1070_v20 }
 0x5b5   : > { %1073 = vst [vmem:[%s244_s12] sm:$0xff] %v1069_v31 }
 0x5b6   : > { %v1062_v32 = vpop.permute.xlu1 %1061 }
 0x5b7   : > { %v1071_v35 = vmul.f32 %v1351_v34, %v1062_v32 }
 0x5b9   : > { %1075 = vst [vmem:[%s244_s12 + $0x10] sm:$0xff] %v1071_v35 }
 0x5ba   : > { %v1067_v37 = vpop.permute.xlu1 %1066 }
 0x5bb   : > { %v1072_v40 = vmul.f32 %v1352_v38, %v1067_v37 }
 0x5bd   : > { %1076 = vst [vmem:[%s244_s12 + $0x18] sm:$0xff] %v1072_v40 }
 0x5be   : > { %1366 = shalt.err (!%p1363_p3)
}
 0x5bf   : > { %s1367_s15 = scalar_lea.hbm %s1740_s18, 512  ;;  %s1371_s10 = scalar_lea.hbm %s1789_s6, 1024 }
 0x5c0   : > { %p1368_p4 = scmp.ne.s32.totalorder %s1740_s18, %s1367_s15  ;;  %p1372_p9 = scmp.lt.u32.totalorder %s1740_s18, %s1789_s6 }
 0x5c1   : > { %p1373_p10 = scmp.lt.u32.totalorder %s1371_s10, %s1367_s15  ;;  %p1375_p12 = scmp.lt.u32.totalorder %s1367_s15, %s1740_s18 }
 0x5c2   : > { %p1369_p7 = pnand %p1368_p4, %p1538_p5 }
 0x5c3   : > { %p1374_p11 = por %p1373_p10, %p1372_p9 }
 0x5c4   : > { %p1370_p8 = pneg %p1369_p7 }
 0x5c5   : > { %p1376_p13 = por %p1375_p12, %p1374_p11 }
 0x5c7   : > { %p1377_p0 = pnand %p1376_p13, %p1370_p8 }
 0x5c9   : > { %1380 = shalt.err (!%p1377_p0)
}
 0x5ca   : > { %s1463_s14 = smov 128   ;;  %s1464_s16 = smov 8  }
 0x5cb   : > { %1251 = dma.vmem_to_hbm [thread:$0]  (%p1538_p5), %s1734_s13, 512, %s1740_s18, %s1742_s19, %s1463_s14, %s1463_s14, %s1464_s16  }
 0x5cc PF: > { %p1257_p1 = scmp.ge.s32.totalorder %s1415_s24, 2  ;;  %s1106_s17 = sand.u32 1, %s1403_s21  }
 0x5cd   : > { %s1107_s20 = scalar_lea.sflag [#allocation3], %s1106_s17 }
 0x5ce   : > { %p1254_p2 = pnand %p1257_p1, %p1542_p6 }
 0x5d0   : > { %1398 = dma.done.wait (!%p1254_p2), %s1107_s20, 512  }
 0x5d1   : > { %1400 = vsyncadd (!%p1254_p2), %s1107_s20, 4294966784  ;;  %p16_p3 = scmp.ge.s32.totalorder %s1525_s27, 4   ;;  %s1792_s21 = smov %s1407_s22 }
 0x5d2   : > { %s1793_s22 = smov %s1411_s23  ;;  %s1794_s23 = smov %s1536_s30 }
 0x5d3   : > { %s1795_s24 = smov %s1525_s27  ;;  %18 = sbr.rel (!%p16_p3) target bundleno = 3 (0x3), region = 79 }
 0x5da   :  { %1112 = vsyncpa [#allocation3], 1 }
 0x5db   :  { %1114 = vsyncpa [#allocation3 + $0x1], 1 }

</bundles_post_ra>
